<compile_context>
chip_gen: v7x
topology: tpu7x:2x2x1
jax: 0.10.0
libtpu: 0.0.40
codegen_flags: <defaults>
</compile_context>

<pallas_src>
import functools
import math

import jax
import jax.numpy as jnp
from jax.experimental import pallas as pl
from jax.experimental.pallas import tpu as pltpu

# ArcFaceLoss hyperparameters (module __init__ defaults)
MARGIN = 0.5
SCALE = 64.0
EPSILON = 0.1
LABEL_SMOOTH = True

_NEG_INF = -1e30  # finite "minus infinity": exp(_NEG_INF - m) underflows to 0


def _round_up(x, m):
    return ((x + m - 1) // m) * m


def _arcface_kernel(cos_ref, tgt_ref, zt_ref, out_ref,
                    m_scr, s_scr, zsum_scr,
                    *, num_classes, tile_c, scale, epsilon, label_smooth):
    j = pl.program_id(1)
    nj = pl.num_programs(1)

    @pl.when(j == 0)
    def _init():
        m_scr[...] = jnp.full(m_scr.shape, _NEG_INF, dtype=jnp.float32)
        s_scr[...] = jnp.zeros(s_scr.shape, dtype=jnp.float32)
        zsum_scr[...] = jnp.zeros(zsum_scr.shape, dtype=jnp.float32)

    x = cos_ref[...]                     # (TB, TC) input dtype
    col0 = j * tile_c
    rel_t = tgt_ref[...] - col0          # (TB, 1) i32: target column within tile
    z_t = zt_ref[...]                    # (TB, 1) f32: margin-adjusted target logit

    def accumulate(limit):
        u = x.astype(jnp.float32) * scale
        # Raw 0..tc-1 iota (grid-invariant); thresholds are shifted instead.
        col = jax.lax.broadcasted_iota(jnp.int32, u.shape, 1)
        # Splice the precomputed target logit into this tile (1 cmp + 1 sel per
        # element). Keeping this in the hot loop preserves log_softmax accuracy.
        z = jnp.where(col == rel_t, z_t, u)
        if limit is None:                        # full tile: no masking work
            z_sum_in = z
            z_lse_in = z
        else:                                    # ragged last class tile only
            valid = col < limit
            z_sum_in = jnp.where(valid, z, 0.0)
            z_lse_in = jnp.where(valid, z, _NEG_INF)

        # Running per-row state: sum of logits, online log-sum-exp.
        zsum_scr[...] += jnp.sum(z_sum_in, axis=1, keepdims=True)
        m_prev = m_scr[...]
        m_new = jnp.maximum(m_prev, jnp.max(z_lse_in, axis=1, keepdims=True))
        s_scr[...] = (s_scr[...] * jnp.exp(m_prev - m_new)
                      + jnp.sum(jnp.exp(z_lse_in - m_new), axis=1, keepdims=True))
        m_scr[...] = m_new

    if num_classes % tile_c == 0:
        # No class padding anywhere: single fast path, no masking at all.
        accumulate(None)
    else:
        @pl.when(j < nj - 1)
        def _fast_tiles():
            accumulate(None)

        @pl.when(j == nj - 1)
        def _ragged_tile():
            accumulate(num_classes - col0)

    @pl.when(j == nj - 1)
    def _finalize():
        lse = m_scr[...] + jnp.log(s_scr[...])
        if label_smooth:
            # Algebraic smoothing: loss = lse - (1-eps)*z_t - (eps/C)*sum_j z_j
            loss = (lse
                    - (1.0 - epsilon) * z_t
                    - (epsilon / float(num_classes)) * zsum_scr[...])
        else:
            loss = lse - z_t
        out_ref[...] = loss


def arcface_loss(cos_theta, target, *, tile_b=256, tile_c=8192,
                 margin=MARGIN, scale=SCALE, epsilon=EPSILON,
                 label_smooth=LABEL_SMOOTH):
    """cos_theta: (B, C) f32/bf16, target: (B,) int -> scalar f32 mean loss."""
    B, C = cos_theta.shape
    sub = 8 if cos_theta.dtype.itemsize == 4 else 16   # (8/16, 128) tiling rule

    # Legal, clamped tiles. Cap tile_b so the batch ("parallel") axis has at
    # least 2 tiles when B allows it -> both v7x TensorCores get work.
    tile_c = min(tile_c, _round_up(C, 128))
    tile_b = min(tile_b,
                 _round_up(B, sub),
                 max(sub, _round_up(_round_up(B, sub) // 2, sub)))
    tile_b = _round_up(tile_b, sub)

    grid = (pl.cdiv(B, tile_b), pl.cdiv(C, tile_c))

    # Tiny per-row side inputs (B elements each): target column index and the
    # margin-adjusted target logit z_t = s*cos(acos(x_t)+m), via the exact
    # identity cos(acos(x)+m) = x*cos(m) - sqrt(1-x^2)*sin(m)  (acos has no
    # Mosaic lowering; identity is exact for |x| <= 1, clamped otherwise).
    tgt = target.reshape(B, 1).astype(jnp.int32)
    x_t = jnp.take_along_axis(cos_theta, tgt, axis=1).astype(jnp.float32)
    sin_t = jnp.sqrt(jnp.maximum(1.0 - x_t * x_t, 0.0))
    z_t = scale * (x_t * math.cos(margin) - sin_t * math.sin(margin))

    kernel = functools.partial(
        _arcface_kernel,
        num_classes=C, tile_c=tile_c,
        scale=float(scale), epsilon=float(epsilon), label_smooth=label_smooth)

    losses = pl.pallas_call(
        kernel,
        out_shape=jax.ShapeDtypeStruct((B, 1), jnp.float32),
        grid_spec=pltpu.PrefetchScalarGridSpec(
            num_scalar_prefetch=0,
            grid=grid,
            in_specs=[
                pl.BlockSpec((tile_b, tile_c), lambda i, j: (i, j)),  # cos_theta
                pl.BlockSpec((tile_b, 1), lambda i, j: (i, 0)),       # target col
                pl.BlockSpec((tile_b, 1), lambda i, j: (i, 0)),       # z_t
            ],
            out_specs=pl.BlockSpec((tile_b, 1), lambda i, j: (i, 0)),  # per-row loss
            scratch_shapes=[pltpu.VMEM((tile_b, 1), jnp.float32)] * 3,
        ),
        compiler_params=pltpu.CompilerParams(
            dimension_semantics=("parallel", "arbitrary"),
            vmem_limit_bytes=32 * 1024 * 1024,
        ),
    )(cos_theta, tgt, z_t)

    # Tiny final reduction (B floats) in plain JAX.
    return jnp.mean(losses[:, 0])


def arcface_loss_ref(cos_theta, target, *, margin=MARGIN, scale=SCALE,
                     epsilon=EPSILON, label_smooth=LABEL_SMOOTH):
    """Pure-JAX reference mirroring the PyTorch module (uses arccos)."""
    B, C = cos_theta.shape
    one_hot = jax.nn.one_hot(target, C, dtype=jnp.float32)
    output = scale * jnp.cos(jnp.arccos(cos_theta.astype(jnp.float32))
                             + margin * one_hot)
    logp = jax.nn.log_softmax(output, axis=1)
    if label_smooth:
        t = (1.0 - epsilon) * one_hot + epsilon / float(C)
    else:
        t = one_hot
    return (-(t * logp).sum(axis=1)).mean()


if __name__ == "__main__":
    # Small but non-trivial: exercises batch tiling, multi-tile class streaming
    # and the ragged last class tile (600 % 256 != 0 -> masked path).
    B, C = 16, 600
    key = jax.random.PRNGKey(0)
    k1, k2 = jax.random.split(key)
    cos_theta = jax.random.uniform(k1, (B, C), jnp.float32,
                                   minval=-0.999, maxval=0.999)
    target = jax.random.randint(k2, (B,), 0, C, dtype=jnp.int32)

    # Explicit small tiles: grid (2, 3), target column split across class tiles.
    loss_small = jax.block_until_ready(
        arcface_loss(cos_theta, target, tile_b=8, tile_c=256))
    # Default tile config (auto-clamped to the problem size).
    loss_default = jax.block_until_ready(arcface_loss(cos_theta, target))
    # Plain cross-entropy path (label_smooth=False).
    loss_ce = jax.block_until_ready(
        arcface_loss(cos_theta, target, label_smooth=False))

    ref = jax.block_until_ready(arcface_loss_ref(cos_theta, target))
    ref_ce = jax.block_until_ready(
        arcface_loss_ref(cos_theta, target, label_smooth=False))

    assert jnp.isfinite(loss_small) and jnp.isfinite(loss_default), "non-finite loss"
    assert jnp.isfinite(loss_ce), "non-finite loss"
    assert jnp.allclose(loss_small, ref, rtol=1e-4, atol=1e-3), (loss_small, ref)
    assert jnp.allclose(loss_default, ref, rtol=1e-4, atol=1e-3), (loss_default, ref)
    assert jnp.allclose(loss_ce, ref_ce, rtol=1e-4, atol=1e-3), (loss_ce, ref_ce)
    print("KERNEL_OK")
</pallas_src>

<mosaic_0001>
module attributes {stable_mosaic.version = 11 : i64} {
  func.func @_arcface_kernel(%arg0: i32, %arg1: i32, %arg2: memref<8x256xf32, #tpu.memory_space<vmem>>, %arg3: memref<8x1xi32, #tpu.memory_space<vmem>>, %arg4: memref<8x1xf32, #tpu.memory_space<vmem>>, %arg5: memref<8x1xf32, #tpu.memory_space<vmem>>, %arg6: memref<8x1xf32, #tpu.memory_space<vmem>>, %arg7: memref<8x1xf32, #tpu.memory_space<vmem>>, %arg8: memref<8x1xf32, #tpu.memory_space<vmem>>) attributes {dimension_semantics = [#tpu.dimension_semantics<parallel>, #tpu.dimension_semantics<arbitrary>], iteration_bounds = array<i64: 2, 3>, scalar_prefetch = 0 : i64, scratch_operands = 3 : i64, tpu.core_type = #tpu.core_type<tc>, window_params = [{transform_indices = @transform_0, window_bounds = array<i64: 8, 256>}, {transform_indices = @transform_1, window_bounds = array<i64: 8, 1>}, {transform_indices = @transform_2, window_bounds = array<i64: 8, 1>}, {transform_indices = @transform_3, window_bounds = array<i64: 8, 1>}]} {
    %c0_i32 = arith.constant 0 : i32
    %0 = arith.cmpi eq, %arg1, %c0_i32 : i32
    %1 = arith.extui %0 : i1 to i32
    %c0_i32_0 = arith.constant 0 : i32
    %2 = arith.cmpi ne, %1, %c0_i32_0 : i32
    scf.if %2 {
      %cst = arith.constant -1.000000e+30 : f32
      %18 = vector.broadcast %cst : f32 to vector<8x1xf32>
      %c0_11 = arith.constant 0 : index
      %c0_12 = arith.constant 0 : index
      %19 = vector.load %arg6[%c0_11, %c0_12] : memref<8x1xf32, #tpu.memory_space<vmem>>, vector<8x1xf32>
      tpu.vector_store %arg6[%c0_11, %c0_12], %18 {strides = array<i32>} : memref<8x1xf32, #tpu.memory_space<vmem>>, vector<8x1xf32>,
      %cst_13 = arith.constant 0.000000e+00 : f32
      %20 = vector.broadcast %cst_13 : f32 to vector<8x1xf32>
      %c0_14 = arith.constant 0 : index
      %c0_15 = arith.constant 0 : index
      %21 = vector.load %arg7[%c0_14, %c0_15] : memref<8x1xf32, #tpu.memory_space<vmem>>, vector<8x1xf32>
      tpu.vector_store %arg7[%c0_14, %c0_15], %20 {strides = array<i32>} : memref<8x1xf32, #tpu.memory_space<vmem>>, vector<8x1xf32>,
      %cst_16 = arith.constant 0.000000e+00 : f32
      %22 = vector.broadcast %cst_16 : f32 to vector<8x1xf32>
      %c0_17 = arith.constant 0 : index
      %c0_18 = arith.constant 0 : index
      %23 = vector.load %arg8[%c0_17, %c0_18] : memref<8x1xf32, #tpu.memory_space<vmem>>, vector<8x1xf32>
      tpu.vector_store %arg8[%c0_17, %c0_18], %22 {strides = array<i32>} : memref<8x1xf32, #tpu.memory_space<vmem>>, vector<8x1xf32>,
    } else {
    }
    %c0 = arith.constant 0 : index
    %c0_1 = arith.constant 0 : index
    %3 = vector.load %arg2[%c0, %c0_1] : memref<8x256xf32, #tpu.memory_space<vmem>>, vector<8x256xf32>
    %c256_i32 = arith.constant 256 : i32
    %4 = arith.muli %arg1, %c256_i32 : i32
    %c0_2 = arith.constant 0 : index
    %c0_3 = arith.constant 0 : index
    %5 = vector.load %arg3[%c0_2, %c0_3] : memref<8x1xi32, #tpu.memory_space<vmem>>, vector<8x1xi32>
    %6 = vector.broadcast %4 : i32 to vector<8x1xi32>
    %7 = arith.subi %5, %6 : vector<8x1xi32>
    %c0_4 = arith.constant 0 : index
    %c0_5 = arith.constant 0 : index
    %8 = vector.load %arg4[%c0_4, %c0_5] : memref<8x1xf32, #tpu.memory_space<vmem>>, vector<8x1xf32>
    %c2_i32 = arith.constant 2 : i32
    %9 = arith.cmpi slt, %arg1, %c2_i32 : i32
    %10 = arith.extui %9 : i1 to i32
    %c0_i32_6 = arith.constant 0 : i32
    %11 = arith.cmpi ne, %10, %c0_i32_6 : i32
    scf.if %11 {
      %cst = arith.constant 6.400000e+01 : f32
      %18 = vector.broadcast %cst : f32 to vector<8x256xf32>
      %19 = arith.mulf %3, %18 : vector<8x256xf32>
      %20 = tpu.iota {dimensions = array<i32: 1>} : vector<8x256xi32>
      %21 = vector.broadcast %7 : vector<8x1xi32> to vector<8x256xi32>
      %22 = arith.cmpi eq, %20, %21 : vector<8x256xi32>
      %23 = vector.shape_cast %8 : vector<8x1xf32> to vector<8x1xf32>
      %24 = vector.broadcast %23 : vector<8x1xf32> to vector<8x256xf32>
      %25 = arith.select %22, %24, %19 : vector<8x256xi1>, vector<8x256xf32>
      %c0_11 = arith.constant 0 : index
      %c0_12 = arith.constant 0 : index
      %26 = vector.load %arg8[%c0_11, %c0_12] : memref<8x1xf32, #tpu.memory_space<vmem>>, vector<8x1xf32>
      %cst_13 = arith.constant dense<0.000000e+00> : vector<8xf32>
      %27 = vector.multi_reduction <add>, %25, %cst_13 [1] : vector<8x256xf32> to vector<8xf32>
      %28 = vector.shape_cast %27 : vector<8xf32> to vector<8x1xf32>
      %29 = arith.addf %26, %28 : vector<8x1xf32>
      %c0_14 = arith.constant 0 : index
      %c0_15 = arith.constant 0 : index
      %30 = vector.load %arg8[%c0_14, %c0_15] : memref<8x1xf32, #tpu.memory_space<vmem>>, vector<8x1xf32>
      tpu.vector_store %arg8[%c0_14, %c0_15], %29 {strides = array<i32>} : memref<8x1xf32, #tpu.memory_space<vmem>>, vector<8x1xf32>,
      %c0_16 = arith.constant 0 : index
      %c0_17 = arith.constant 0 : index
      %31 = vector.load %arg6[%c0_16, %c0_17] : memref<8x1xf32, #tpu.memory_space<vmem>>, vector<8x1xf32>
      %cst_18 = arith.constant dense<0xFF800000> : vector<8xf32>
      %32 = vector.multi_reduction <maximumf>, %25, %cst_18 [1] : vector<8x256xf32> to vector<8xf32>
      %33 = vector.shape_cast %32 : vector<8xf32> to vector<8x1xf32>
      %34 = arith.maximumf %31, %33 : vector<8x1xf32>
      %c0_19 = arith.constant 0 : index
      %c0_20 = arith.constant 0 : index
      %35 = vector.load %arg7[%c0_19, %c0_20] : memref<8x1xf32, #tpu.memory_space<vmem>>, vector<8x1xf32>
      %36 = arith.subf %31, %34 : vector<8x1xf32>
      %37 = math.exp %36 : vector<8x1xf32>
      %38 = arith.mulf %35, %37 : vector<8x1xf32>
      %39 = vector.broadcast %34 : vector<8x1xf32> to vector<8x256xf32>
      %40 = arith.subf %25, %39 : vector<8x256xf32>
      %41 = math.exp %40 : vector<8x256xf32>
      %cst_21 = arith.constant dense<0.000000e+00> : vector<8xf32>
      %42 = vector.multi_reduction <add>, %41, %cst_21 [1] : vector<8x256xf32> to vector<8xf32>
      %43 = vector.shape_cast %42 : vector<8xf32> to vector<8x1xf32>
      %44 = arith.addf %38, %43 : vector<8x1xf32>
      %c0_22 = arith.constant 0 : index
      %c0_23 = arith.constant 0 : index
      %45 = vector.load %arg7[%c0_22, %c0_23] : memref<8x1xf32, #tpu.memory_space<vmem>>, vector<8x1xf32>
      tpu.vector_store %arg7[%c0_22, %c0_23], %44 {strides = array<i32>} : memref<8x1xf32, #tpu.memory_space<vmem>>, vector<8x1xf32>,
      %c0_24 = arith.constant 0 : index
      %c0_25 = arith.constant 0 : index
      %46 = vector.load %arg6[%c0_24, %c0_25] : memref<8x1xf32, #tpu.memory_space<vmem>>, vector<8x1xf32>
      tpu.vector_store %arg6[%c0_24, %c0_25], %34 {strides = array<i32>} : memref<8x1xf32, #tpu.memory_space<vmem>>, vector<8x1xf32>,
    } else {
    }
    %c2_i32_7 = arith.constant 2 : i32
    %12 = arith.cmpi eq, %arg1, %c2_i32_7 : i32
    %13 = arith.extui %12 : i1 to i32
    %c0_i32_8 = arith.constant 0 : i32
    %14 = arith.cmpi ne, %13, %c0_i32_8 : i32
    scf.if %14 {
      %c600_i32 = arith.constant 600 : i32
      %18 = arith.subi %c600_i32, %4 : i32
      %cst = arith.constant 6.400000e+01 : f32
      %19 = vector.broadcast %cst : f32 to vector<8x256xf32>
      %20 = arith.mulf %3, %19 : vector<8x256xf32>
      %21 = tpu.iota {dimensions = array<i32: 1>} : vector<8x256xi32>
      %22 = vector.broadcast %7 : vector<8x1xi32> to vector<8x256xi32>
      %23 = arith.cmpi eq, %21, %22 : vector<8x256xi32>
      %24 = vector.shape_cast %8 : vector<8x1xf32> to vector<8x1xf32>
      %25 = vector.broadcast %24 : vector<8x1xf32> to vector<8x256xf32>
      %26 = arith.select %23, %25, %20 : vector<8x256xi1>, vector<8x256xf32>
      %27 = vector.broadcast %18 : i32 to vector<8x256xi32>
      %28 = arith.cmpi slt, %21, %27 : vector<8x256xi32>
      %cst_11 = arith.constant 0.000000e+00 : f32
      %29 = vector.broadcast %cst_11 : f32 to vector<8x256xf32>
      %30 = arith.select %28, %26, %29 : vector<8x256xi1>, vector<8x256xf32>
      %cst_12 = arith.constant -1.000000e+30 : f32
      %31 = vector.broadcast %cst_12 : f32 to vector<8x256xf32>
      %32 = arith.select %28, %26, %31 : vector<8x256xi1>, vector<8x256xf32>
      %c0_13 = arith.constant 0 : index
      %c0_14 = arith.constant 0 : index
      %33 = vector.load %arg8[%c0_13, %c0_14] : memref<8x1xf32, #tpu.memory_space<vmem>>, vector<8x1xf32>
      %cst_15 = arith.constant dense<0.000000e+00> : vector<8xf32>
      %34 = vector.multi_reduction <add>, %30, %cst_15 [1] : vector<8x256xf32> to vector<8xf32>
      %35 = vector.shape_cast %34 : vector<8xf32> to vector<8x1xf32>
      %36 = arith.addf %33, %35 : vector<8x1xf32>
      %c0_16 = arith.constant 0 : index
      %c0_17 = arith.constant 0 : index
      %37 = vector.load %arg8[%c0_16, %c0_17] : memref<8x1xf32, #tpu.memory_space<vmem>>, vector<8x1xf32>
      tpu.vector_store %arg8[%c0_16, %c0_17], %36 {strides = array<i32>} : memref<8x1xf32, #tpu.memory_space<vmem>>, vector<8x1xf32>,
      %c0_18 = arith.constant 0 : index
      %c0_19 = arith.constant 0 : index
      %38 = vector.load %arg6[%c0_18, %c0_19] : memref<8x1xf32, #tpu.memory_space<vmem>>, vector<8x1xf32>
      %cst_20 = arith.constant dense<0xFF800000> : vector<8xf32>
      %39 = vector.multi_reduction <maximumf>, %32, %cst_20 [1] : vector<8x256xf32> to vector<8xf32>
      %40 = vector.shape_cast %39 : vector<8xf32> to vector<8x1xf32>
      %41 = arith.maximumf %38, %40 : vector<8x1xf32>
      %c0_21 = arith.constant 0 : index
      %c0_22 = arith.constant 0 : index
      %42 = vector.load %arg7[%c0_21, %c0_22] : memref<8x1xf32, #tpu.memory_space<vmem>>, vector<8x1xf32>
      %43 = arith.subf %38, %41 : vector<8x1xf32>
      %44 = math.exp %43 : vector<8x1xf32>
      %45 = arith.mulf %42, %44 : vector<8x1xf32>
      %46 = vector.broadcast %41 : vector<8x1xf32> to vector<8x256xf32>
      %47 = arith.subf %32, %46 : vector<8x256xf32>
      %48 = math.exp %47 : vector<8x256xf32>
      %cst_23 = arith.constant dense<0.000000e+00> : vector<8xf32>
      %49 = vector.multi_reduction <add>, %48, %cst_23 [1] : vector<8x256xf32> to vector<8xf32>
      %50 = vector.shape_cast %49 : vector<8xf32> to vector<8x1xf32>
      %51 = arith.addf %45, %50 : vector<8x1xf32>
      %c0_24 = arith.constant 0 : index
      %c0_25 = arith.constant 0 : index
      %52 = vector.load %arg7[%c0_24, %c0_25] : memref<8x1xf32, #tpu.memory_space<vmem>>, vector<8x1xf32>
      tpu.vector_store %arg7[%c0_24, %c0_25], %51 {strides = array<i32>} : memref<8x1xf32, #tpu.memory_space<vmem>>, vector<8x1xf32>,
      %c0_26 = arith.constant 0 : index
      %c0_27 = arith.constant 0 : index
      %53 = vector.load %arg6[%c0_26, %c0_27] : memref<8x1xf32, #tpu.memory_space<vmem>>, vector<8x1xf32>
      tpu.vector_store %arg6[%c0_26, %c0_27], %41 {strides = array<i32>} : memref<8x1xf32, #tpu.memory_space<vmem>>, vector<8x1xf32>,
    } else {
    }
    %c2_i32_9 = arith.constant 2 : i32
    %15 = arith.cmpi eq, %arg1, %c2_i32_9 : i32
    %16 = arith.extui %15 : i1 to i32
    %c0_i32_10 = arith.constant 0 : i32
    %17 = arith.cmpi ne, %16, %c0_i32_10 : i32
    scf.if %17 {
      %c0_11 = arith.constant 0 : index
      %c0_12 = arith.constant 0 : index
      %18 = vector.load %arg6[%c0_11, %c0_12] : memref<8x1xf32, #tpu.memory_space<vmem>>, vector<8x1xf32>
      %c0_13 = arith.constant 0 : index
      %c0_14 = arith.constant 0 : index
      %19 = vector.load %arg7[%c0_13, %c0_14] : memref<8x1xf32, #tpu.memory_space<vmem>>, vector<8x1xf32>
      %20 = math.log %19 : vector<8x1xf32>
      %21 = arith.addf %18, %20 : vector<8x1xf32>
      %cst = arith.constant 0.899999976 : f32
      %22 = vector.broadcast %cst : f32 to vector<8x1xf32>
      %23 = arith.mulf %22, %8 : vector<8x1xf32>
      %24 = arith.subf %21, %23 : vector<8x1xf32>
      %c0_15 = arith.constant 0 : index
      %c0_16 = arith.constant 0 : index
      %25 = vector.load %arg8[%c0_15, %c0_16] : memref<8x1xf32, #tpu.memory_space<vmem>>, vector<8x1xf32>
      %cst_17 = arith.constant 1.66666665E-4 : f32
      %26 = vector.broadcast %cst_17 : f32 to vector<8x1xf32>
      %27 = arith.mulf %26, %25 : vector<8x1xf32>
      %28 = arith.subf %24, %27 : vector<8x1xf32>
      %c0_18 = arith.constant 0 : index
      %c0_19 = arith.constant 0 : index
      %29 = vector.load %arg5[%c0_18, %c0_19] : memref<8x1xf32, #tpu.memory_space<vmem>>, vector<8x1xf32>
      tpu.vector_store %arg5[%c0_18, %c0_19], %28 {strides = array<i32>} : memref<8x1xf32, #tpu.memory_space<vmem>>, vector<8x1xf32>,
    } else {
    }
    return
  }
  func.func @transform_0(%arg0: i32, %arg1: i32) -> (i32, i32) {
    %c0_i32 = arith.constant 0 : i32
    return %arg0, %arg1 : i32, i32
  }
  func.func @transform_1(%arg0: i32, %arg1: i32) -> (i32, i32) {
    %c0_i32 = arith.constant 0 : i32
    %c0_i32_0 = arith.constant 0 : i32
    return %arg0, %c0_i32 : i32, i32
  }
  func.func @transform_2(%arg0: i32, %arg1: i32) -> (i32, i32) {
    %c0_i32 = arith.constant 0 : i32
    %c0_i32_0 = arith.constant 0 : i32
    return %arg0, %c0_i32 : i32, i32
  }
  func.func @transform_3(%arg0: i32, %arg1: i32) -> (i32, i32) {
    %c0_i32 = arith.constant 0 : i32
    %c0_i32_0 = arith.constant 0 : i32
    return %arg0, %c0_i32 : i32, i32
  }
}

</mosaic_0001>

<bundles_post_ra>
// kernel: tpu_custom_call.1
= control target key start
LH: loop header
LB: loop body
LE: loop exit
PB: predicated region body
PF: predicated region fallthrough
CT: control target
= control target key end

     0   :  { %8 = vsyncpa [#allocation6], 0  ;;  %s904_s0 = inlined_call_operand.hbm [shape: f32[16,600], index: 0, kind: input, shape index: {}]   ;;  %s905_s1 = inlined_call_operand.vmem [shape: s32[16,1], index: 1, kind: input, shape index: {}]   ;;  %s906_s2 = inlined_call_operand.vmem [shape: f32[16,1], index: 2, kind: input, shape index: {}]   ;;  %s907_s3 = inlined_call_operand.vmem [shape: f32[16,1], index: 3, kind: output, shape index: {}]  }
   0x1   :  { %10 = vsyncpa [#allocation6 + $0x1], 0  ;;  %s726_s12 = smov 0   ;;  %s728_s13 = smov 0  }
   0x2   :  { %s730_s14 = smov 0   ;;  %s732_s15 = smov 0  }
   0x3   :  { %s734_s16 = smov 0   ;;  %s736_s17 = smov 0  }
   0x4   :  { %s738_s18 = smov 0   ;;  %s740_s19 = smov 0  }
   0x5 LB: > { %s25_s20 = sadd.s32 1, %s691_s17  ;;  %s28_s21 = sadd.s32 1, %s695_s18  ;;  %s699_s19 = sphi %s740_s19, %s16_s19   ;;  %s695_s18 = sphi %s738_s18, %s918_s18   ;;  %s691_s17 = sphi %s736_s17, %s917_s17   ;;  %s687_s16 = sphi %s734_s16, %s916_s16   ;;  %s683_s15 = sphi %s732_s15, %s915_s15   ;;  %s679_s14 = sphi %s730_s14, %s914_s14   ;;  %s675_s13 = sphi %s728_s13, %s913_s13   ;;  %s671_s12 = sphi %s726_s12, %s912_s12  }
   0x6   : > { %p26_p0 = scmp.ge.s32.totalorder %s25_s20, 3  ;;  %s495_s22 = sadd.s32 4294967295, %s699_s19  }
   0x7   : > { %p44_p1 = scmp.ne.s32.totalorder %s679_s14, %s675_s13  ;;  %p45_p2 = scmp.eq.s32.totalorder %s699_s19, 0 }
   0x8   : > { %s920_s20 = smov (%p26_p0, %s25_s20), 0  ;;  %s922_s21 = smov (!%p26_p0, %s28_s21), %s695_s18 }
   0x9   : > { %s33_s23 = ssub.s32 %s691_s17, %s920_s20  ;;  %p30_p3 = scmp.ge.s32.totalorder %s922_s21, 2 }
   0xa   : > { %p50_p4 = scmp.ne.s32.totalorder %s675_s13, %s671_s12  ;;  %p46_p5 = por %p45_p2, %p44_p1 }
   0xb   : > { %p51_p6 = scmp.eq.s32.totalorder %s495_s22, 0  ;;  %s924_s21 = smov (%p30_p3, %s922_s21), 0 }
   0xc   : > { %909 = sst [smem:[#allocation8_spill]] %s924_s21  ;;  %s32_s25 = ssub.s32 %s695_s18, %s924_s21 }
   0xd   : > { %p778_p7 = por %p51_p6, %p50_p4  ;;  %s34_s26 = sor.u32 %s33_s23, %s32_s25 }
   0xe   : > { %s37_s27 = sadd.s32 1, %s679_s14  ;;  %p35_p8 = scmp.eq.s32.totalorder %s34_s26, 0 }
   0xf   : > { %p498_p9 = scmp.ge.s32.totalorder %s699_s19, 6 }
  0x10   : > { %s786_s28 = scalar_select %p35_p8, %s679_s14, %s37_s27  }
  0x11   : > { %148 = sbr.rel (%p498_p9) target bundleno = 60 (0x3c), region = 16 }
  0x18   : > { %151 = sbr.rel (!%p46_p5) target bundleno = 60 (0x3c), region = 20  ;;  %s152_s29 = sand.u32 (%p46_p5), 1, %s679_s14  }
  0x19   : > { %s500_s30 = sshll.u32 (%p46_p5), %s691_s17, 1  ;;  %s499_s4 = sshll.u32 (%p46_p5), %s152_s29, 4 }
  0x1a   : > { %s158_s5 = ssub.s32 (%p46_p5), 5, %s500_s30  ;;  %s794_s8 = scalar_lea.sflag (%p46_p5), [#allocation6], %s152_s29 }
  0x1b   : > { %p159_p10 = scmp.lt.s32.totalorder (%p46_p5), %s158_s5, 2  ;;  %s156_s9 = scalar_lea.vmem (%p46_p5), [#allocation5], %s499_s4 }
  0x1f   : > { %s926_s5 = smov (!%p159_p10, %s158_s5), 2 }
  0x20   : > { %s791_s6 = sshll.u32 %s926_s5, 7 }
  0x21   : > { %s163_s7 = ssub.s32 256, %s791_s6 }
  0x22   : > { %164 = vsyncadd %s794_s8, %s163_s7  ;;  %s517_s10 = smul.u32 5, %s695_s18  ;;  %p502_p11 = scmp.ne.s32.totalorder %s791_s6, 0 }
  0x23   : > { %s172_s11 = sshll.u32 %s156_s9, 4  ;;  %s609_s5 = scalar_lea.hbm %s904_s0, 1280  ;;  %s799_s11 = int_to_ptr.vmem [resolvable:$true] %s172_s11 }
  0x24   : > { %s167_s12 = sadd.s32 %s517_s10, %s500_s30 }
  0x25   : > { %s503_s22 = sshll.u32 %s167_s12, 7 }
  0x26   : > { %s169_s26 = scalar_lea.hbm %s904_s0, %s503_s22 }
  0x27   : > { %s605_s27 = scalar_lea.hbm %s169_s26, %s791_s6  ;;  %p610_p1 = scmp.lt.u32.totalorder %s169_s26, %s904_s0 }
  0x28   : > { %p606_p12 = scmp.ne.s32.totalorder %s169_s26, %s605_s27  ;;  %p611_p2 = scmp.lt.u32.totalorder %s609_s5, %s605_s27 }
  0x29   : > { %p613_p4 = scmp.lt.u32.totalorder %s605_s27, %s169_s26 }
  0x2a   : > { %p607_p13 = pnand %p606_p12, %p502_p11  ;;  %p612_p3 = por %p611_p2, %p610_p1 }
  0x2c   : > { %p608_p0 = pneg %p607_p13  ;;  %p614_p5 = por %p613_p4, %p612_p3 }
  0x2e   : > { %p615_p6 = pnand %p614_p5, %p608_p0 }
  0x30   : > { %618 = shalt.err (!%p615_p6)
}
  0x31   : > { %s619_s30 = scalar_lea.vmem %s799_s11, %s791_s6  ;;  %s701_s9 = smov [#allocation5]  }
  0x32   : > { %p620_p8 = scmp.ne.s32.totalorder %s799_s11, %s619_s30  ;;  %s623_s10 = sshll.u32 %s701_s9, 4  ;;  %s624_s10 = int_to_ptr.vmem [resolvable:$false] %s623_s10 }
  0x33   : > { %s625_s21 = scalar_lea.vmem %s624_s10, 512  ;;  %p626_p12 = scmp.lt.s32.totalorder %s799_s11, %s624_s10 }
  0x34   : > { %p621_p9 = pnand %p620_p8, %p502_p11  ;;  %p627_p13 = scmp.lt.s32.totalorder %s625_s21, %s619_s30 }
  0x36   : > { %p622_p10 = pneg %p621_p9  ;;  %p628_p1 = por %p627_p13, %p626_p12 }
  0x38   : > { %p629_p2 = pnand %p628_p1, %p622_p10 }
  0x3a   : > { %632 = shalt.err (!%p629_p2)
}
  0x3b   : > { %175 = dma.hbm_to_vmem [thread:$0]  (%p502_p11), %s169_s26, %s791_s6, %s799_s11, %s794_s8  }
  0x3c PF: > { %p506_p0 = scmp.ge.s32.totalorder %s699_s19, 1  ;;  %p191_p3 = scmp.lt.s32.totalorder %s699_s19, 7 }
  0x3e   : > { %p192_p4 = pnand %p506_p0, %p191_p3 }
  0x3f   : > { %s197_s12 = sand.u32 (!%p192_p4), 1, %s675_s13  }
  0x40   : > { %195 = sbr.rel (%p192_p4) target bundleno = 1256 (0x4e8), region = 32  ;;  %s507_s22 = sshll.u32 (!%p192_p4), %s197_s12, 4 }
  0x41   : > { %s198_s23 = scalar_lea.sflag (!%p192_p4), [#allocation6], %s197_s12  ;;  %s201_s25 = scalar_lea.vmem (!%p192_p4), [#allocation5], %s507_s22 }
  0x47   : > { %666 = dma.done.wait (%p778_p7), %s198_s23, 256  }
  0x48   : > { %668 = vsyncadd (%p778_p7), %s198_s23, 4294967040  ;;  %p236_p11 = scmp.lt.s32.totalorder %s687_s16, 1  ;;  %p511_p7 = scmp.ne.s32.totalorder %s683_s15, 0 }
  0x49   : > { %vm252_vm0 = vcmask (!%p511_p7), 7168   ;;  %v702_v0 = vmov (!%p511_p7), -1e+30   ;;  %v703_v1 = vmov (!%p511_p7), 0.0  }
  0x4a   : > { %s928_s16 = smov (!%p236_p11, %s687_s16), 1  ;;  %251 = sbr.rel (%p511_p7) target bundleno = 81 (0x51), region = 40 }
  0x4b   : > { %s833_s6 = sshll.u32 %s928_s16, 3  ;;  %253 = vst.msk [vmem:[#allocation2] sm:$0xff] (!%p511_p7), %vm252_vm0, %v702_v0  ;;  %254 = vst.msk [vmem:[#allocation3] sm:$0xff] (!%p511_p7), %vm252_vm0, %v703_v1 }
  0x4c   : > { %s239_s26 = scalar_lea.vmem %s905_s1, %s833_s6  ;;  %s243_s4 = scalar_lea.vmem %s906_s2, %s833_s6  ;;  %255 = vst.msk [vmem:[#allocation4] sm:$0xff] (!%p511_p7), %vm252_vm0, %v703_v1 }
  0x4d   : > { %s247_s7 = scalar_lea.vmem %s907_s3, %s833_s6 }
  0x51 PF: > { %v848_v2 = vld [vmem:[%s201_s25] sm:$0xff]  ;;  %v850_v3 = vld [vmem:[%s201_s25 + $0x8] sm:$0xff]  ;;  %s512_s16 = sshll.u32 %s683_s15, 8  ;;  %p513_p5 = scmp.ge.s32.totalorder %s683_s15, 2 }
  0x52   : > { %v259_v4 = vld [vmem:[%s239_s26] sm:$0xff]  ;;  %v260_v5 = vstv %s512_s16  ;;  %v704_v8 = vmov (!%p513_p5), 0   ;;  %v269_v9 = vlaneseq (!%p513_p5)  ;;  %v267_v13 = vmul.f32 (!%p513_p5), 64.0, %v848_v2  ;;  %v296_v37 = vld [vmem:[#allocation3] sm:$0xff] (!%p513_p5) }
  0x53   : > { %v855_v6 = vld [vmem:[%s243_s4] sm:$0xff]  ;;  %v261_v7 = vsub.s32 %v259_v4, %v260_v5  ;;  %266 = sbr.rel (%p513_p5) target bundleno = 655 (0x28f), region = 44  ;;  %587 = vset.pattern.permute.xlu0 (!%p513_p5), %v704_v8  ;;  %588 = vset.pattern.permute.xlu1 (!%p513_p5), %v704_v8  ;;  %v268_v14 = vmul.f32 (!%p513_p5), 64.0, %v850_v3  ;;  %v284_v21 = vld [vmem:[#allocation4] sm:$0xff] (!%p513_p5)  ;;  %vm289_vm3 = vcmask (!%p513_p5), 7168  }
  0x54   : > { %v270_v10 = vand.u32 (!%p513_p5), 127, %v269_v9  ;;  %v291_v20 = vld [vmem:[#allocation2] sm:$0xff] (!%p513_p5) }
  0x55   : > { %273 = vperm.xlu0 (!%p513_p5), %587, %v261_v7  }
  0x56   : > { %v271_v12 = vadd.s32 (!%p513_p5), 128, %v270_v10 }
  0x59   : > { %279 = vperm.xlu0 (!%p513_p5), %587, %v855_v6  }
  0xd4   : > { %v274_v11 = vpop.permute.xlu0 %273 }
  0xd5   : > { %vm275_vm1 = vcmp.eq.s32.totalorder %v270_v10, %v274_v11  ;;  %vm276_vm2 = vcmp.eq.s32.totalorder %v271_v12, %v274_v11 }
  0xd8   : > { %v280_v15 = vpop.permute.xlu0 %279 }
  0xd9   : > { %v282_v16 = vsel %vm275_vm1, %v280_v15, %v267_v13  ;;  %v283_v17 = vsel %vm276_vm2, %v280_v15, %v268_v14 }
  0xda   : > { %v292_v18 = vmax.f32 %v282_v16, %v283_v17  ;;  %v285_v19 = vadd.f32 %v283_v17, %v282_v16 }
  0xdc   : > { %293 = vmax.xlane.f32.xlu1 %v292_v18  ;;  %286 = vadd.xlane.f32.xlu0 %v285_v19 }
 0x169   : > { %v294_v22 = vpop.xlane.xlu1 %293  ;;  %v287_v23 = vpop.xlane.xlu0 %286 }
 0x16a   : > { %v295_v24 = vmax.f32 %v291_v20, %v294_v22  ;;  %v288_v25 = vadd.f32 %v287_v23, %v284_v21 }
 0x16c   : > { %v297_v26 = vsub.f32 %v291_v20, %v295_v24  ;;  %317 = vst.msk [vmem:[#allocation2] sm:$0xff] %vm289_vm3, %v295_v24  ;;  %290 = vst.msk [vmem:[#allocation4] sm:$0xff] %vm289_vm3, %v288_v25  ;;  %303 = vperm.xlu1 %588, %v295_v24  }
 0x16e   : > { %v298_v35 = vmul.f32 1.442695, %v297_v26 }
 0x1eb   : > { %v304_v27 = vpop.permute.xlu1 %303 }
 0x1ec   : > { %v306_v28 = vsub.f32 %v282_v16, %v304_v27  ;;  %v307_v29 = vsub.f32 %v283_v17, %v304_v27 }
 0x1ee   : > { %v308_v30 = vmul.f32 1.442695, %v306_v28  ;;  %v310_v31 = vmul.f32 1.442695, %v307_v29 }
 0x1f0   : > { %589 = vpow2.f32 %v308_v30 }
 0x1f1   : > { %591 = vpow2.f32 %v310_v31 }
 0x1f2   : > { %593 = vpow2.f32 %v298_v35 }
 0x1fa   : > { %v590_v32 = vpop.eup %589 }
 0x1fb   : > { %v592_v33 = vpop.eup %591 }
 0x1fc   : > { %v312_v34 = vadd.f32 %v592_v33, %v590_v32  ;;  %v594_v36 = vpop.eup %593 }
 0x1fd   : > { %v300_v38 = vmul.f32 %v594_v36, %v296_v37 }
 0x1fe   : > { %313 = vadd.xlane.f32.xlu1 %v312_v34 }
 0x28b   : > { %v314_v39 = vpop.xlane.xlu1 %313 }
 0x28c   : > { %v315_v40 = vadd.f32 %v314_v39, %v300_v38 }
 0x28e   : > { %316 = vst.msk [vmem:[#allocation3] sm:$0xff] %vm289_vm3, %v315_v40 }
 0x28f PF: > { %p514_p6 = scmp.ne.s32.totalorder %s683_s15, 2 }
 0x290   : > { %v705_v41 = vmov (!%p514_p6), 0   ;;  %v325_v42 = vlaneseq (!%p514_p6)  ;;  %s322_s30 = ssub.s32 (!%p514_p6), 600, %s512_s16  ;;  %v323_v47 = vmul.f32 (!%p514_p6), 64.0, %v848_v2  ;;  %v324_v48 = vmul.f32 (!%p514_p6), 64.0, %v850_v3  ;;  %v354_v58 = vld [vmem:[#allocation2] sm:$0xff] (!%p514_p6) }
 0x291   : > { %321 = sbr.rel (%p514_p6) target bundleno = 1256 (0x4e8), region = 48  ;;  %595 = vset.pattern.permute.xlu0 (!%p514_p6), %v705_v41  ;;  %596 = vset.pattern.permute.xlu1 (!%p514_p6), %v705_v41  ;;  %v340_v46 = vstv (!%p514_p6), %s322_s30  ;;  %vm352_vm8 = vcmask (!%p514_p6), 7168   ;;  %v386_v18 = vmul.f32 (!%p514_p6), 0.9, %v855_v6 }
 0x292   : > { %329 = vperm.xlu0 (!%p514_p6), %595, %v261_v7   ;;  %v326_v43 = vand.u32 (!%p514_p6), 127, %v325_v42  ;;  %v347_v7 = vld [vmem:[#allocation4] sm:$0xff] (!%p514_p6) }
 0x294   : > { %v327_v45 = vadd.s32 (!%p514_p6), 128, %v326_v43  ;;  %vm341_vm4 = vcmp.lt.s32.totalorder (!%p514_p6), %v326_v43, %v340_v46 }
 0x295   : > { %v359_v12 = vld [vmem:[#allocation3] sm:$0xff] (!%p514_p6) }
 0x296   : > { %335 = vperm.xlu0 (!%p514_p6), %595, %v855_v6   ;;  %vm342_vm5 = vcmp.lt.s32.totalorder (!%p514_p6), %v327_v45, %v340_v46 }
 0x311   : > { %v330_v44 = vpop.permute.xlu0 %329 }
 0x312   : > { %vm331_vm6 = vcmp.eq.s32.totalorder %v326_v43, %v330_v44  ;;  %vm332_vm7 = vcmp.eq.s32.totalorder %v327_v45, %v330_v44 }
 0x315   : > { %v336_v49 = vpop.permute.xlu0 %335 }
 0x316   : > { %v338_v50 = vsel %vm331_vm6, %v336_v49, %v323_v47  ;;  %v339_v51 = vsel %vm332_vm7, %v336_v49, %v324_v48 }
 0x317   : > { %v345_v52 = vsel %vm341_vm4, %v338_v50, -1e+30  ;;  %v346_v53 = vsel %vm342_vm5, %v339_v51, -1e+30  ;;  %v343_v54 = vsel %vm341_vm4, %v338_v50, 0.0  ;;  %v344_v55 = vsel %vm342_vm5, %v339_v51, 0.0 }
 0x318   : > { %v355_v56 = vmax.f32 %v345_v52, %v346_v53  ;;  %v348_v57 = vadd.f32 %v344_v55, %v343_v54 }
 0x31a   : > { %356 = vmax.xlane.f32.xlu1 %v355_v56 }
 0x3a7   : > { %v357_v59 = vpop.xlane.xlu1 %356 }
 0x3a8   : > { %v358_v60 = vmax.f32 %v354_v58, %v357_v59 }
 0x3aa   : > { %v360_v61 = vsub.f32 %v354_v58, %v358_v60  ;;  %380 = vst.msk [vmem:[#allocation2] sm:$0xff] %vm352_vm8, %v358_v60  ;;  %366 = vperm.xlu1 %596, %v358_v60  }
 0x3ac   : > { %v361_v10 = vmul.f32 1.442695, %v360_v61 }
 0x3b1   : > { %v381_v20 = vld [vmem:[#allocation2] sm:$0xff] }
 0x3ce   : > { %349 = vadd.xlane.f32.xlu1 %v348_v57 }
 0x429   : > { %v367_v62 = vpop.permute.xlu1 %366 }
 0x42a   : > { %v369_v63 = vsub.f32 %v345_v52, %v367_v62  ;;  %v370_v0 = vsub.f32 %v346_v53, %v367_v62 }
 0x42c   : > { %v371_v1 = vmul.f32 1.442695, %v369_v63  ;;  %v373_v2 = vmul.f32 1.442695, %v370_v0 }
 0x42e   : > { %597 = vpow2.f32 %v371_v1 }
 0x42f   : > { %599 = vpow2.f32 %v373_v2 }
 0x430   : > { %601 = vpow2.f32 %v361_v10 }
 0x438   : > { %v598_v3 = vpop.eup %597 }
 0x439   : > { %v600_v4 = vpop.eup %599 }
 0x43a   : > { %v375_v5 = vadd.f32 %v600_v4, %v598_v3  ;;  %v602_v11 = vpop.eup %601 }
 0x43b   : > { %v363_v13 = vmul.f32 %v602_v11, %v359_v12 }
 0x43c   : > { %376 = vadd.xlane.f32.xlu0 %v375_v5 }
 0x45b   : > { %v350_v8 = vpop.xlane.xlu1 %349 }
 0x45c   : > { %v351_v9 = vadd.f32 %v350_v8, %v347_v7 }
 0x45e   : > { %353 = vst.msk [vmem:[#allocation4] sm:$0xff] %vm352_vm8, %v351_v9 }
 0x465   : > { %v388_v21 = vld [vmem:[#allocation4] sm:$0xff] }
 0x466   : > { %v389_v23 = vmul.f32 0.00016666666, %v388_v21 }
 0x4c9   : > { %v377_v14 = vpop.xlane.xlu0 %376 }
 0x4ca   : > { %v378_v15 = vadd.f32 %v377_v14, %v363_v13 }
 0x4cc   : > { %379 = vst.msk [vmem:[#allocation3] sm:$0xff] %vm352_vm8, %v378_v15 }
 0x4d3   : > { %v382_v16 = vld [vmem:[#allocation3] sm:$0xff] }
 0x4d4   : > { %603 = vlog2.f32 %v382_v16 }
 0x4de   : > { %v604_v17 = vpop.eup %603 }
 0x4df   : > { %v384_v19 = vmul.f32 0.6931472, %v604_v17 }
 0x4e1   : > { %v385_v22 = vadd.f32 %v384_v19, %v381_v20 }
 0x4e3   : > { %v387_v24 = vsub.f32 %v385_v22, %v386_v18 }
 0x4e5   : > { %v390_v25 = vsub.f32 %v387_v24, %v389_v23 }
 0x4e7   : > { %391 = vst.msk [vmem:[%s247_s7] sm:$0xff] %vm352_vm8, %v390_v25 }
 0x4e8 PF: > { %s16_s19 = sadd.s32 1, %s699_s19   ;;  %s911_s10 = sld [smem:[#allocation8_spill]] }
 0x4e9   : > { %p13_p8 = scmp.ge.s32.totalorder %s16_s19, 8   ;;  %s912_s12 = smov %s675_s13 }
 0x4ea   : > { %s913_s13 = smov %s679_s14  ;;  %s914_s14 = smov %s786_s28 }
 0x4eb   : > { %s915_s15 = smov %s691_s17  ;;  %s916_s16 = smov %s695_s18 }
 0x4ec   : > { %s917_s17 = smov %s920_s20  ;;  %15 = sbr.rel (!%p13_p8) target bundleno = 5 (0x5), region = 90 }
 0x4ee   : > { %s918_s18 = smov %s911_s10 }
 0x4f3   :  { %411 = vsyncpa [#allocation6], 1 }
 0x4f4   :  { %413 = vsyncpa [#allocation6 + $0x1], 1 }

</bundles_post_ra>
